<compile_context>
chip_gen: v5e
topology: v5e:2x2
jax: 0.10.0
libtpu: 0.0.40
codegen_flags: <defaults>
</compile_context>

<pallas_src>
import functools

import jax
import jax.numpy as jnp
from jax import lax
from jax.experimental import pallas as pl
from jax.experimental.pallas import tpu as pltpu

NUM_CLASSES = 10
_LANE = 128
_MAX_TILE_B = 2048  # rows (samples) per grid step; multiple of 128


def _round_up(x, m):
    return ((x + m - 1) // m) * m


def _mse_loss_kernel(pred_ref, label_ref, loss_ref, *, inv_b):
    """One batch tile, class-major: pred (NC, T), labels (1, T) -> SMEM scalar."""
    i = pl.program_id(0)

    @pl.when(i == 0)
    def _():
        loss_ref[0, 0] = 0.0

    pred = pred_ref[...].astype(jnp.float32)            # (NC, T) upcast on vreg
    labels = label_ref[...]                             # (1, T) int32
    nc, t = pred.shape

    # one-hot built in-register: class-id iota on the sublane axis vs labels
    cls = lax.broadcasted_iota(jnp.int32, (nc, t), 0)
    onehot = (cls == labels).astype(jnp.float32)        # padded cols -> all-zero

    d = pred - onehot
    sumsq = jnp.sum(d * d, axis=0, keepdims=True)       # (1, T): sublane VPU reduce
    per_row = jnp.sqrt(sumsq)                           # lane-dense per-sample L2
    loss_ref[0, 0] += jnp.sum(per_row)                  # padded cols add sqrt(0)=0

    @pl.when(i == pl.num_programs(0) - 1)
    def _():
        loss_ref[0, 0] = loss_ref[0, 0] * inv_b


def mse_loss(inference, ground_truth):
    """inference: (B, 10) float; ground_truth: (B,) int class ids -> scalar f32."""
    B, nc = inference.shape
    assert nc == NUM_CLASSES

    tile_b = min(_MAX_TILE_B, _round_up(B, _LANE))
    b_pad = _round_up(B, tile_b)
    pad = b_pad - B

    # class-major, lane-dense presentation: batch on the 128-lane axis.
    pred_t = jnp.swapaxes(inference, 0, 1)              # (NC, B), native dtype
    labels = ground_truth.astype(jnp.int32).reshape(1, B)
    if pad:
        pred_t = jnp.pad(pred_t, ((0, 0), (0, pad)))
        labels = jnp.pad(labels, ((0, 0), (0, pad)),
                         constant_values=NUM_CLASSES)   # never matches a class

    grid = (b_pad // tile_b,)

    out = pl.pallas_call(
        functools.partial(_mse_loss_kernel, inv_b=1.0 / B),
        out_shape=jax.ShapeDtypeStruct((1, 1), jnp.float32),
        grid=grid,
        in_specs=[
            pl.BlockSpec((NUM_CLASSES, tile_b), lambda i: (0, i)),
            pl.BlockSpec((1, tile_b), lambda i: (0, i)),
        ],
        out_specs=pl.BlockSpec((1, 1), lambda i: (0, 0),
                               memory_space=pltpu.MemorySpace.SMEM),
        compiler_params=pltpu.CompilerParams(
            dimension_semantics=("arbitrary",),          # reduction axis
            vmem_limit_bytes=16 * 1024 * 1024,           # ample; safe on v5e/v6e/v7x
        ),
    )(pred_t, labels)
    return out[0, 0]


def _reference(inference, ground_truth):
    ohe = jax.nn.one_hot(ground_truth, NUM_CLASSES, dtype=jnp.float32)
    return jnp.mean(jnp.sqrt(jnp.sum((inference - ohe) ** 2, axis=1)))


if __name__ == "__main__":
    key = jax.random.PRNGKey(0)
    kx, kgt = jax.random.split(key)

    # small case (B=2, pads 2 -> 128 inside one tile)
    B = 2
    inference = jax.random.normal(kx, (B, NUM_CLASSES), jnp.float32)
    ground_truth = jax.random.randint(kgt, (B,), 0, NUM_CLASSES)

    loss = jax.jit(mse_loss)(inference, ground_truth)
    jax.block_until_ready(loss)

    ref = _reference(inference, ground_truth)
    assert loss.shape == () and loss.dtype == jnp.float32
    assert jnp.abs(loss - ref) < 1e-5, (loss, ref)

    # second check exercising the non-multiple-of-128 padding path
    B2 = 300
    kx2, kgt2 = jax.random.split(jax.random.PRNGKey(1))
    inf2 = jax.random.normal(kx2, (B2, NUM_CLASSES), jnp.float32)
    gt2 = jax.random.randint(kgt2, (B2,), 0, NUM_CLASSES)
    loss2 = jax.jit(mse_loss)(inf2, gt2)
    jax.block_until_ready(loss2)
    ref2 = _reference(inf2, gt2)
    assert jnp.abs(loss2 - ref2) < 1e-4, (loss2, ref2)

    print("KERNEL_OK")
</pallas_src>

<mosaic_0001>
module attributes {stable_mosaic.version = 11 : i64} {
  func.func @_mse_loss_kernel(%arg0: i32, %arg1: memref<10x128xf32, #tpu.memory_space<vmem>>, %arg2: memref<1x128xi32, #tpu.memory_space<vmem>>, %arg3: memref<1x1xf32, #tpu.memory_space<smem>>) attributes {dimension_semantics = [#tpu.dimension_semantics<arbitrary>], iteration_bounds = array<i64: 1>, scalar_prefetch = 0 : i64, scratch_operands = 0 : i64, tpu.core_type = #tpu.core_type<tc>, window_params = [{transform_indices = @transform_0, window_bounds = array<i64: 10, 128>}, {transform_indices = @transform_1, window_bounds = array<i64: 1, 128>}, {transform_indices = @transform_2, window_bounds = array<i64: 1, 1>}]} {
    %c0_i32 = arith.constant 0 : i32
    %0 = arith.cmpi eq, %arg0, %c0_i32 : i32
    %1 = arith.extui %0 : i1 to i32
    %c0_i32_0 = arith.constant 0 : i32
    %2 = arith.cmpi ne, %1, %c0_i32_0 : i32
    scf.if %2 {
      %cst_11 = arith.constant 0.000000e+00 : f32
      %c0_12 = arith.constant 0 : index
      %c0_13 = arith.constant 0 : index
      %25 = memref.load %arg3[%c0_12, %c0_13] : memref<1x1xf32, #tpu.memory_space<smem>>
      memref.store %cst_11, %arg3[%c0_12, %c0_13] : memref<1x1xf32, #tpu.memory_space<smem>>
    } else {
    }
    %c0 = arith.constant 0 : index
    %c0_1 = arith.constant 0 : index
    %3 = vector.load %arg1[%c0, %c0_1] : memref<10x128xf32, #tpu.memory_space<vmem>>, vector<10x128xf32>
    %c0_2 = arith.constant 0 : index
    %c0_3 = arith.constant 0 : index
    %4 = vector.load %arg2[%c0_2, %c0_3] : memref<1x128xi32, #tpu.memory_space<vmem>>, vector<1x128xi32>
    %5 = tpu.iota {dimensions = array<i32: 0>} : vector<10x128xi32>
    %6 = vector.broadcast %4 : vector<1x128xi32> to vector<10x128xi32>
    %7 = arith.cmpi eq, %5, %6 : vector<10x128xi32>
    %8 = arith.extui %7 : vector<10x128xi1> to vector<10x128xi32>
    %9 = arith.sitofp %8 : vector<10x128xi32> to vector<10x128xf32>
    %10 = arith.subf %3, %9 : vector<10x128xf32>
    %11 = arith.mulf %10, %10 : vector<10x128xf32>
    %cst = arith.constant dense<0.000000e+00> : vector<128xf32>
    %12 = vector.multi_reduction <add>, %11, %cst [0] : vector<10x128xf32> to vector<128xf32>
    %13 = vector.shape_cast %12 : vector<128xf32> to vector<1x128xf32>
    %14 = math.sqrt %13 : vector<1x128xf32>
    %c0_4 = arith.constant 0 : index
    %c0_5 = arith.constant 0 : index
    %15 = memref.load %arg3[%c0_4, %c0_5] : memref<1x1xf32, #tpu.memory_space<smem>>
    %16 = vector.shape_cast %14 : vector<1x128xf32> to vector<1x1x128xf32>
    %cst_6 = arith.constant dense<0.000000e+00> : vector<1xf32>
    %17 = vector.multi_reduction <add>, %16, %cst_6 [1, 2] : vector<1x1x128xf32> to vector<1xf32>
    %18 = vector.shape_cast %17 : vector<1xf32> to vector<1x1x1xf32>
    %19 = vector.extract %18[0, 0, 0] : f32 from vector<1x1x1xf32>
    %20 = arith.addf %15, %19 : f32
    %c0_7 = arith.constant 0 : index
    %c0_8 = arith.constant 0 : index
    %21 = memref.load %arg3[%c0_7, %c0_8] : memref<1x1xf32, #tpu.memory_space<smem>>
    memref.store %20, %arg3[%c0_7, %c0_8] : memref<1x1xf32, #tpu.memory_space<smem>>
    %c0_i32_9 = arith.constant 0 : i32
    %22 = arith.cmpi eq, %arg0, %c0_i32_9 : i32
    %23 = arith.extui %22 : i1 to i32
    %c0_i32_10 = arith.constant 0 : i32
    %24 = arith.cmpi ne, %23, %c0_i32_10 : i32
    scf.if %24 {
      %c0_11 = arith.constant 0 : index
      %c0_12 = arith.constant 0 : index
      %25 = memref.load %arg3[%c0_11, %c0_12] : memref<1x1xf32, #tpu.memory_space<smem>>
      %cst_13 = arith.constant 5.000000e-01 : f32
      %26 = arith.mulf %25, %cst_13 : f32
      %c0_14 = arith.constant 0 : index
      %c0_15 = arith.constant 0 : index
      %27 = memref.load %arg3[%c0_14, %c0_15] : memref<1x1xf32, #tpu.memory_space<smem>>
      memref.store %26, %arg3[%c0_14, %c0_15] : memref<1x1xf32, #tpu.memory_space<smem>>
    } else {
    }
    return
  }
  func.func @transform_0(%arg0: i32) -> (i32, i32) {
    %c0_i32 = arith.constant 0 : i32
    %c0_i32_0 = arith.constant 0 : i32
    return %c0_i32, %arg0 : i32, i32
  }
  func.func @transform_1(%arg0: i32) -> (i32, i32) {
    %c0_i32 = arith.constant 0 : i32
    %c0_i32_0 = arith.constant 0 : i32
    return %c0_i32, %arg0 : i32, i32
  }
  func.func @transform_2(%arg0: i32) -> (i32, i32) {
    %c0_i32 = arith.constant 0 : i32
    %c0_i32_0 = arith.constant 0 : i32
    %c0_i32_1 = arith.constant 0 : i32
    return %c0_i32, %c0_i32_0 : i32, i32
  }
}

</mosaic_0001>

<bundles_post_ra>
// kernel: mse_loss.1
= control target key start
LH: loop header
LB: loop body
LE: loop exit
PB: predicated region body
PF: predicated region fallthrough
CT: control target
= control target key end

     0   :  { %v21_v0 = vlaneseq  ;;  %s145_s0 = inlined_call_operand.vmem [shape: f32[10,128], index: 0, kind: input, shape index: {}]   ;;  %s146_s1 = inlined_call_operand.vmem [shape: s32[1,128], index: 1, kind: input, shape index: {}]   ;;  %s147_s2 = inlined_call_operand.hbm [shape: f32[1,1], index: 2, kind: output, shape index: {}]  }
   0x1   :  { %v99_v1 = vld [vmem:[%s146_s1] ss:$0 sm:$0xff] }
   0x2   :  { %7 = vsyncpa [#allocation3], 0  ;;  %v22_v2 = vshrl.u32 %v21_v0, 7  ;;  %v18_v3 = vld [vmem:[%s145_s0] sm:$0xff]  ;;  %v19_v5 = vld [vmem:[%s145_s0 + $0x8] sm:$0x3] }
   0x3   :  { %v116_v6 = vmov 0.0   ;;  %vm35_vm2 = vcmask 1041408   ;;  %vm57_vm5 = vcmask 1040384   ;;  %s82_s15 = sshll.u32 %s147_s2, 4  ;;  %s117_s18 = smov [#allocation2]   ;;  %s83_s15 = int_to_ptr.hbm [resolvable:$true] %s82_s15 }
   0x4   :  { %v23_v4 = vadd.s32 8, %v22_v2  ;;  %vm25_vm0 = vcmp.eq.s32.totalorder %v22_v2, %v99_v1 }
   0x5   :  { %v92_v7 = vsel %vm25_vm0, 1.0, %v116_v6 }
   0x6   :  { %vm26_vm1 = vcmp.eq.s32.totalorder %v23_v4, %v99_v1  ;;  %v31_v8 = vsub.f32 %v18_v3, %v92_v7 }
   0x7   :  { %v93_v9 = vsel %vm26_vm1, 1.0, %v116_v6 }
   0x8   :  { %v32_v10 = vsub.f32 %v19_v5, %v93_v9  ;;  %v33_v11 = vmul.f32 %v31_v8, %v31_v8 }
   0xa   :  { %v34_v12 = vmul.f32 %v32_v10, %v32_v10 }
   0xc   :  { %v36_v13 = vsel %vm35_vm2, %v34_v12, 0.0 }
   0xd   :  { %v37_v14 = vadd.f32 %v36_v13, %v33_v11 }
   0xf   :  { %v38_v15 = vrot.slane %v37_v14, 4 }
  0x11   :  { %v39_v16 = vadd.f32 %v38_v15, %v37_v14 }
  0x13   :  { %v40_v17 = vrot.slane %v39_v16, 2 }
  0x15   :  { %v41_v18 = vadd.f32 %v40_v17, %v39_v16 }
  0x17   :  { %v42_v19 = vrot.slane %v41_v18, 1 }
  0x19   :  { %v43_v20 = vadd.f32 %v42_v19, %v41_v18 }
  0x1b   :  { %100 = vrsqrt.f32 %v43_v20  ;;  %vm51_vm3 = vcmp.eq.f32.partialorder %v43_v20, inf  ;;  %v54_v27 = vand.u32 2147483648, %v43_v20  ;;  %vm53_vm4 = vcmp.eq.f32.partialorder %v43_v20, 0.0 }
  0x21   :  { %v101_v21 = vpop.eup %100 }
  0x22   :  { %v45_v22 = vmul.f32 %v101_v21, %v43_v20 }
  0x24   :  { %v46_v23 = vmul.f32 %v101_v21, %v45_v22 }
  0x26   :  { %v47_v24 = vmul.f32 0.5, %v46_v23 }
  0x28   :  { %v48_v25 = vsub.f32 1.5, %v47_v24 }
  0x2a   :  { %v49_v26 = vmul.f32 %v101_v21, %v48_v25 }
  0x2c   :  { %v50_v28 = vmul.f32 %v49_v26, %v43_v20 }
  0x2e   :  { %v52_v29 = vsel %vm51_vm3, %v43_v20, %v50_v28 }
  0x2f   :  { %v55_v30 = vsel %vm53_vm4, %v54_v27, %v52_v29 }
  0x30   :  { %v58_v31 = vsel %vm57_vm5, %v55_v30, 0.0 }
  0x31   :  { %59 = vadd.xlane.f32.xlu0 %v58_v31 }
  0xa4   :  { %v60_v32 = vpop.xlane.xlu0 %59 }
  0xa5   :  { %v61_v33 = vrot.slane %v60_v32, 4 }
  0xa7   :  { %v62_v34 = vadd.f32 %v61_v33, %v60_v32 }
  0xa9   :  { %v63_v35 = vrot.slane %v62_v34, 2 }
  0xab   :  { %v64_v36 = vadd.f32 %v63_v35, %v62_v34 }
  0xad   :  { %v65_v37 = vrot.slane %v64_v36, 1 }
  0xaf   :  { %v66_v38 = vadd.f32 %v65_v37, %v64_v36 }
  0xb1   :  { %94 = vpush %v66_v38 }
  0xe2   :  { %s95_s16 = spop %94 }
  0xe3   :  { %s75_s17 = smul.f32 0.5, %s95_s16 }
  0xe5   :  { %76 = sst [smem:[#allocation2]] %s75_s17 }
  0xe6   :  { %85 = dma.smem_to_hbm %s117_s18, 16, %s83_s15, [#allocation3]  }
  0xe7   :  { %114 = dma.done.wait [#allocation3], 16  }
  0xe8   :  { %115 = vsyncadd [#allocation3], 4294967280 }
  0xe9   :  { %90 = sfence }
  0xea   :  { %91 = vsyncpa [#allocation3], 1 }

</bundles_post_ra>
